<compile_context>
chip_gen: v7x
topology: tpu7x:2x2x1
jax: 0.10.0
libtpu: 0.0.40
codegen_flags: <defaults>
</compile_context>

<pallas_src>
import functools

import jax
import jax.numpy as jnp
from jax.experimental import pallas as pl
from jax.experimental.pallas import tpu as pltpu

ALPHA = 0.25   # self.alpha = [alpha, 1 - alpha]; gathered by target in {0, 1}
GAMMA = 2      # module default


def _round_up(x, m):
    return ((x + m - 1) // m) * m


def _focal_loss_kernel(x_ref, t_ref, out_ref, *, total_n, tile_rows, lanes,
                       needs_mask):
    i = pl.program_id(0)

    x = x_ref[...].astype(jnp.float32)
    t = t_ref[...].astype(jnp.float32)

    # binary_cross_entropy_with_logits, reduction='none' (numerically stable form)
    bce = jnp.maximum(x, 0.0) - x * t + jnp.log1p(jnp.exp(-jnp.abs(x)))

    # at = alpha.gather(0, targets): alpha[0]=ALPHA (t==0), alpha[1]=1-ALPHA (t==1)
    # FMA form is valid because t is exactly 0 or 1.
    at = ALPHA + t * (1.0 - 2.0 * ALPHA)

    pt = jnp.exp(-bce)
    w = 1.0 - pt
    if GAMMA == 2:
        focal_w = w * w                 # explicit square: no pow (exp/log) on the EUP
    else:
        focal_w = w ** GAMMA
    f_loss = at * focal_w * bce

    if needs_mask:
        # zero out the padded tail so it does not contribute to the sum
        row = (jax.lax.broadcasted_iota(jnp.int32, (tile_rows, lanes), 0)
               + i * tile_rows)
        col = jax.lax.broadcasted_iota(jnp.int32, (tile_rows, lanes), 1)
        flat = row * lanes + col
        f_loss = jnp.where(flat < total_n, f_loss, 0.0)

    # Fold the tile's rows into an (8, lanes) partial sum. The reshape only
    # splits the sublane axis in groups of 8, so this lowers to vreg + vreg
    # adds on the VPU (no cross-lane reduce per grid step).
    out_ref[...] = f_loss.reshape(tile_rows // 8, 8, lanes).sum(axis=0)


def weighted_focal_loss(inputs, targets, *, tile_rows=1024, lanes=128):
    """Focal loss (alpha=0.25, gamma=2) over all elements; returns the mean."""
    x = inputs.reshape(-1).astype(jnp.float32)
    t = targets.reshape(-1)
    n = x.shape[0]
    assert t.shape[0] == n

    rows_needed = -(-n // lanes)
    # keep tile_rows a multiple of 32 so the int8 targets block tiles cleanly
    tile_rows = min(tile_rows, _round_up(rows_needed, 32))
    padded_rows = _round_up(rows_needed, tile_rows)
    pad = padded_rows * lanes - n

    x2 = jnp.pad(x, (0, pad)).reshape(padded_rows, lanes)
    # targets are {0, 1}: ship them as int8 (1 B/elem instead of 4 B/elem)
    t2 = jnp.pad(t, (0, pad)).astype(jnp.int8).reshape(padded_rows, lanes)

    num_tiles = padded_rows // tile_rows

    kernel = functools.partial(
        _focal_loss_kernel,
        total_n=n, tile_rows=tile_rows, lanes=lanes, needs_mask=(pad > 0),
    )

    partials = pl.pallas_call(
        kernel,
        out_shape=jax.ShapeDtypeStruct((num_tiles * 8, lanes), jnp.float32),
        grid_spec=pltpu.PrefetchScalarGridSpec(
            num_scalar_prefetch=0,
            grid=(num_tiles,),
            in_specs=[
                pl.BlockSpec((tile_rows, lanes), lambda i: (i, 0)),
                pl.BlockSpec((tile_rows, lanes), lambda i: (i, 0)),
            ],
            out_specs=pl.BlockSpec((8, lanes), lambda i: (i, 0)),
        ),
        compiler_params=pltpu.CompilerParams(
            dimension_semantics=("parallel",),   # shardable across TCs on v7x
        ),
    )(x2, t2)

    # tiny final tree-reduce + mean outside the kernel (better numerics than a
    # serial running scalar, and negligible cost vs. the streamed inputs)
    return jnp.sum(partials) / jnp.float32(n)


def _reference(inputs, targets):
    x = inputs.reshape(-1).astype(jnp.float32)
    t = targets.reshape(-1).astype(jnp.float32)
    bce = jnp.maximum(x, 0.0) - x * t + jnp.log1p(jnp.exp(-jnp.abs(x)))
    at = jnp.where(t > 0.5, 1.0 - ALPHA, ALPHA)
    pt = jnp.exp(-bce)
    return jnp.mean(at * (1.0 - pt) ** 2 * bce)


if __name__ == "__main__":
    key = jax.random.PRNGKey(0)
    k1, k2 = jax.random.split(key)

    # small, module-consistent shapes: flat logits / binary labels.
    # N deliberately NOT a multiple of 8*128 to exercise the padding/mask path.
    N = 2000
    inputs = jax.random.normal(k1, (N,), dtype=jnp.float32)
    targets = jax.random.bernoulli(k2, p=0.3, shape=(N,)).astype(jnp.float32)

    loss = weighted_focal_loss(inputs, targets)
    loss = jax.block_until_ready(loss)

    ref = _reference(inputs, targets)
    assert jnp.allclose(loss, ref, rtol=1e-5, atol=1e-6), (loss, ref)

    print("KERNEL_OK")
</pallas_src>

<mosaic_0001>
module attributes {stable_mosaic.version = 11 : i64} {
  func.func @_focal_loss_kernel(%arg0: i32, %arg1: memref<32x128xf32, #tpu.memory_space<vmem>>, %arg2: memref<32x128xi8, #tpu.memory_space<vmem>>, %arg3: memref<8x128xf32, #tpu.memory_space<vmem>>) attributes {dimension_semantics = [#tpu.dimension_semantics<parallel>], iteration_bounds = array<i64: 1>, scalar_prefetch = 0 : i64, scratch_operands = 0 : i64, tpu.core_type = #tpu.core_type<tc>, window_params = [{transform_indices = @transform_0, window_bounds = array<i64: 32, 128>}, {transform_indices = @transform_1, window_bounds = array<i64: 32, 128>}, {transform_indices = @transform_2, window_bounds = array<i64: 8, 128>}]} {
    %c0 = arith.constant 0 : index
    %c0_0 = arith.constant 0 : index
    %0 = vector.load %arg1[%c0, %c0_0] : memref<32x128xf32, #tpu.memory_space<vmem>>, vector<32x128xf32>
    %c0_1 = arith.constant 0 : index
    %c0_2 = arith.constant 0 : index
    %1 = vector.load %arg2[%c0_1, %c0_2] : memref<32x128xi8, #tpu.memory_space<vmem>>, vector<32x128xi8>
    %2 = arith.sitofp %1 : vector<32x128xi8> to vector<32x128xf32>
    %cst = arith.constant 0.000000e+00 : f32
    %3 = vector.broadcast %cst : f32 to vector<32x128xf32>
    %4 = arith.maximumf %0, %3 : vector<32x128xf32>
    %5 = arith.mulf %0, %2 : vector<32x128xf32>
    %6 = arith.subf %4, %5 : vector<32x128xf32>
    %7 = math.absf %0 : vector<32x128xf32>
    %cst_3 = arith.constant 0.000000e+00 : f32
    %8 = vector.broadcast %cst_3 : f32 to vector<32x128xf32>
    %9 = arith.subf %8, %7 : vector<32x128xf32>
    %10 = math.exp %9 : vector<32x128xf32>
    %11 = math.log1p %10 : vector<32x128xf32>
    %12 = arith.addf %6, %11 : vector<32x128xf32>
    %cst_4 = arith.constant 5.000000e-01 : f32
    %13 = vector.broadcast %cst_4 : f32 to vector<32x128xf32>
    %14 = arith.mulf %2, %13 : vector<32x128xf32>
    %cst_5 = arith.constant 2.500000e-01 : f32
    %15 = vector.broadcast %cst_5 : f32 to vector<32x128xf32>
    %16 = arith.addf %15, %14 : vector<32x128xf32>
    %cst_6 = arith.constant 0.000000e+00 : f32
    %17 = vector.broadcast %cst_6 : f32 to vector<32x128xf32>
    %18 = arith.subf %17, %12 : vector<32x128xf32>
    %19 = math.exp %18 : vector<32x128xf32>
    %cst_7 = arith.constant 1.000000e+00 : f32
    %20 = vector.broadcast %cst_7 : f32 to vector<32x128xf32>
    %21 = arith.subf %20, %19 : vector<32x128xf32>
    %22 = arith.mulf %21, %21 : vector<32x128xf32>
    %23 = arith.mulf %16, %22 : vector<32x128xf32>
    %24 = arith.mulf %23, %12 : vector<32x128xf32>
    %25 = tpu.iota {dimensions = array<i32: 0>} : vector<32x128xi32>
    %c32_i32 = arith.constant 32 : i32
    %26 = arith.muli %arg0, %c32_i32 : i32
    %27 = vector.broadcast %26 : i32 to vector<32x128xi32>
    %28 = arith.addi %25, %27 : vector<32x128xi32>
    %29 = tpu.iota {dimensions = array<i32: 1>} : vector<32x128xi32>
    %c128_i32 = arith.constant 128 : i32
    %30 = vector.broadcast %c128_i32 : i32 to vector<32x128xi32>
    %31 = arith.muli %28, %30 : vector<32x128xi32>
    %32 = arith.addi %31, %29 : vector<32x128xi32>
    %c2000_i32 = arith.constant 2000 : i32
    %33 = vector.broadcast %c2000_i32 : i32 to vector<32x128xi32>
    %34 = arith.cmpi slt, %32, %33 : vector<32x128xi32>
    %cst_8 = arith.constant 0.000000e+00 : f32
    %35 = vector.broadcast %cst_8 : f32 to vector<32x128xf32>
    %36 = arith.select %34, %24, %35 : vector<32x128xi1>, vector<32x128xf32>
    %37 = vector.shape_cast %36 : vector<32x128xf32> to vector<4x8x128xf32>
    %cst_9 = arith.constant dense<0.000000e+00> : vector<8x128xf32>
    %38 = vector.multi_reduction <add>, %37, %cst_9 [0] : vector<4x8x128xf32> to vector<8x128xf32>
    %c0_10 = arith.constant 0 : index
    %c0_11 = arith.constant 0 : index
    %39 = vector.load %arg3[%c0_10, %c0_11] : memref<8x128xf32, #tpu.memory_space<vmem>>, vector<8x128xf32>
    tpu.vector_store %arg3[%c0_10, %c0_11], %38 {strides = array<i32>} : memref<8x128xf32, #tpu.memory_space<vmem>>, vector<8x128xf32>,
    return
  }
  func.func @transform_0(%arg0: i32) -> (i32, i32) {
    %c0_i32 = arith.constant 0 : i32
    %c0_i32_0 = arith.constant 0 : i32
    return %arg0, %c0_i32 : i32, i32
  }
  func.func @transform_1(%arg0: i32) -> (i32, i32) {
    %c0_i32 = arith.constant 0 : i32
    %c0_i32_0 = arith.constant 0 : i32
    return %arg0, %c0_i32 : i32, i32
  }
  func.func @transform_2(%arg0: i32) -> (i32, i32) {
    %c0_i32 = arith.constant 0 : i32
    %c0_i32_0 = arith.constant 0 : i32
    return %arg0, %c0_i32 : i32, i32
  }
}

</mosaic_0001>

<bundles_post_ra>
// kernel: tpu_custom_call.1
= control target key start
LH: loop header
LB: loop body
LE: loop exit
PB: predicated region body
PF: predicated region fallthrough
CT: control target
= control target key end

     0   :  { %7 = vsyncpa [#allocation3], 0  ;;  %s409_s0 = inlined_call_operand.hbm [shape: f32[32,128], index: 0, kind: input, shape index: {}]   ;;  %s410_s1 = inlined_call_operand.hbm [shape: s8[32,128], index: 1, kind: input, shape index: {}]   ;;  %s411_s2 = inlined_call_operand.hbm [shape: f32[8,128], index: 2, kind: output, shape index: {}]  }
   0x1   :  { %8 = vsyncpa [#allocation6], 0 }
   0x2   :  { %9 = vsyncpa [#allocation4], 0  ;;  %s305_s9 = smov [#allocation2]   ;;  %s233_s13 = scalar_lea.hbm %s409_s0, 512 }
   0x3   :  { %s15_s10 = sshll.u32 %s305_s9, 4  ;;  %p234_p0 = scmp.ne.s32.totalorder %s409_s0, %s233_s13  ;;  %s16_s10 = int_to_ptr.vmem [resolvable:$true] %s15_s10 }
   0x4   :  { %p237_p1 = scmp.lt.u32.totalorder %s233_s13, %s409_s0 }
   0x6   :  { %p239_p2 = pnand %p237_p1, %p234_p0 }
   0x8   :  { %242 = shalt.err (!%p239_p2)
}
   0x9   :  { %s243_s18 = scalar_lea.vmem %s16_s10, 512  ;;  %p248_p4 = scmp.lt.s32.totalorder %s16_s10, %s16_s10 }
   0xa   :  { %p244_p3 = scmp.ne.s32.totalorder %s16_s10, %s243_s18  ;;  %p249_p5 = scmp.lt.s32.totalorder %s243_s18, %s243_s18 }
   0xc   :  { %p250_p6 = por %p249_p5, %p248_p4 }
   0xe   :  { %p251_p7 = pnand %p250_p6, %p244_p3 }
  0x10   :  { %254 = shalt.err (!%p251_p7)
}
  0x11   :  { %s306_s19 = smov 128   ;;  %s307_s20 = smov 8  }
  0x12   :  { %21 = dma.hbm_to_vmem [thread:$0]  %s409_s0, 512, %s16_s10, [#allocation3], %s306_s19, %s306_s19, %s307_s20  }
  0x13   :  { %s308_s23 = smov [#allocation5]   ;;  %s255_s27 = scalar_lea.hbm %s410_s1, 128 }
  0x14   :  { %s28_s24 = sshll.u32 %s308_s23, 4  ;;  %p256_p8 = scmp.ne.s32.totalorder %s410_s1, %s255_s27  ;;  %s29_s24 = int_to_ptr.vmem [resolvable:$true] %s28_s24 }
  0x15   :  { %p259_p9 = scmp.lt.u32.totalorder %s255_s27, %s410_s1 }
  0x17   :  { %p261_p10 = pnand %p259_p9, %p256_p8 }
  0x19   :  { %264 = shalt.err (!%p261_p10)
}
  0x1a   :  { %s265_s4 = scalar_lea.vmem %s29_s24, 128  ;;  %p270_p12 = scmp.lt.s32.totalorder %s29_s24, %s29_s24 }
  0x1b   :  { %p266_p11 = scmp.ne.s32.totalorder %s29_s24, %s265_s4  ;;  %p271_p13 = scmp.lt.s32.totalorder %s265_s4, %s265_s4 }
  0x1d   :  { %p272_p0 = por %p271_p13, %p270_p12 }
  0x1f   :  { %p273_p1 = pnand %p272_p0, %p266_p11 }
  0x21   :  { %276 = shalt.err (!%p273_p1)
}
  0x22   :  { %31 = dma.hbm_to_vmem [thread:$0]  %s410_s1, 128, %s29_s24, [#allocation6]  }
  0x23   :  { %299 = dma.done.wait [#allocation3], 512  }
  0x24   :  { %300 = vsyncadd [#allocation3], 4294966784 }
  0x25   :  { %301 = dma.done.wait [#allocation6], 128  }
  0x26   :  { %302 = vsyncadd [#allocation6], 4294967168  ;;  %v349_v0 = vld [vmem:[#allocation2] sm:$0xff]  ;;  %v351_v1 = vld [vmem:[#allocation2 + $0x8] sm:$0xff]  ;;  %s309_s1 = smov [#allocation7]  }
  0x27   :  { %v353_v2 = vld [vmem:[#allocation2 + $0x10] sm:$0xff]  ;;  %v355_v3 = vld [vmem:[#allocation2 + $0x18] sm:$0xff]  ;;  %v63_v4 = vand.u32 2147483647, %v349_v0  ;;  %v64_v5 = vand.u32 2147483647, %v351_v1 }
  0x28   :  { %v65_v6 = vand.u32 2147483647, %v353_v2  ;;  %v66_v7 = vand.u32 2147483647, %v355_v3  ;;  %v42_v16 = vld [vmem:[#allocation5] sm:$0xff]  ;;  %v51_v38 = vmax.f32 %v349_v0, 0.0 }
  0x29   :  { %v67_v8 = vsub.f32 0.0, %v63_v4  ;;  %v68_v9 = vsub.f32 0.0, %v64_v5  ;;  %v43_v19 = vunpack.c.0.s8 %v42_v16  ;;  %v44_v22 = vunpack.c.1.s8 %v42_v16  ;;  %s194_s6 = sshll.u32 %s309_s1, 4  ;;  %s195_s6 = int_to_ptr.vmem [resolvable:$true] %s194_s6 }
  0x2a   :  { %v69_v10 = vsub.f32 0.0, %v65_v6  ;;  %v70_v11 = vsub.f32 0.0, %v66_v7  ;;  %v45_v25 = vunpack.c.2.s8 %v42_v16  ;;  %v46_v27 = vunpack.c.3.s8 %v42_v16  ;;  %s277_s7 = scalar_lea.vmem %s195_s6, 128  ;;  %p282_p3 = scmp.lt.s32.totalorder %s195_s6, %s195_s6 }
  0x2b   :  { %v71_v12 = vmul.f32 1.442695, %v67_v8  ;;  %v73_v13 = vmul.f32 1.442695, %v68_v9  ;;  %v361_v29 = vcvt.s32.f32 %v43_v19  ;;  %v363_v32 = vcvt.s32.f32 %v44_v22  ;;  %p278_p2 = scmp.ne.s32.totalorder %s195_s6, %s277_s7  ;;  %p283_p4 = scmp.lt.s32.totalorder %s277_s7, %s277_s7 }
  0x2c   :  { %v75_v14 = vmul.f32 1.442695, %v69_v10  ;;  %v77_v15 = vmul.f32 1.442695, %v70_v11  ;;  %v365_v34 = vcvt.s32.f32 %v45_v25  ;;  %v367_v35 = vcvt.s32.f32 %v46_v27 }
  0x2d   :  { %209 = vpow2.f32 %v71_v12  ;;  %v55_v39 = vmul.f32 %v361_v29, %v349_v0  ;;  %v52_v42 = vmax.f32 %v351_v1, 0.0  ;;  %v56_v43 = vmul.f32 %v363_v32, %v351_v1  ;;  %p284_p5 = por %p283_p4, %p282_p3 }
  0x2e   :  { %211 = vpow2.f32 %v73_v13  ;;  %v53_v46 = vmax.f32 %v353_v2, 0.0  ;;  %v57_v47 = vmul.f32 %v365_v34, %v353_v2  ;;  %v54_v49 = vmax.f32 %v355_v3, 0.0 }
  0x2f   :  { %213 = vpow2.f32 %v75_v14  ;;  %v58_v50 = vmul.f32 %v367_v35, %v355_v3  ;;  %v59_v54 = vsub.f32 %v51_v38, %v55_v39  ;;  %v60_v59 = vsub.f32 %v52_v42, %v56_v43  ;;  %p285_p6 = pnand %p284_p5, %p278_p2 }
  0x30   :  { %215 = vpow2.f32 %v77_v15  ;;  %v61_v0 = vsub.f32 %v53_v46, %v57_v47  ;;  %v155_v16 = vlaneseq  ;;  %v119_v27 = vmul.f32 0.5, %v361_v29 }
  0x31   :  { %v62_v6 = vsub.f32 %v54_v49, %v58_v50 }
  0x32   :  { %v123_v42 = vadd.f32 0.25, %v119_v27 }
  0x37   :  { %v210_v17 = vpop.eup %209 }
  0x38   :  { %v212_v18 = vpop.eup %211  ;;  %v79_v20 = vadd.f32 1.0, %v210_v17  ;;  %v82_v28 = vmul.f32 -0.5, %v210_v17  ;;  %v85_v40 = vand.u32 2147483647, %v210_v17 }
  0x39   :  { %v214_v21 = vpop.eup %213  ;;  %v88_v23 = vadd.f32 1.0, %v212_v18  ;;  %v91_v30 = vmul.f32 -0.5, %v212_v18  ;;  %v94_v44 = vand.u32 2147483647, %v212_v18 }
  0x3a   :  { %v216_v24 = vpop.eup %215  ;;  %217 = vlog2.f32 %v79_v20  ;;  %v97_v26 = vadd.f32 1.0, %v214_v21  ;;  %v100_v33 = vmul.f32 -0.5, %v214_v21  ;;  %v83_v36 = vadd.f32 1.0, %v82_v28 }
  0x3b   :  { %219 = vlog2.f32 %v88_v23  ;;  %v106_v31 = vadd.f32 1.0, %v216_v24  ;;  %v109_v37 = vmul.f32 -0.5, %v216_v24  ;;  %v92_v41 = vadd.f32 1.0, %v91_v30 }
  0x3c   :  { %221 = vlog2.f32 %v97_v26  ;;  %v101_v45 = vadd.f32 1.0, %v100_v33  ;;  %v103_v48 = vand.u32 2147483647, %v214_v21  ;;  %v84_v51 = vmul.f32 %v210_v17, %v83_v36 }
  0x3d   :  { %223 = vlog2.f32 %v106_v31  ;;  %v110_v52 = vadd.f32 1.0, %v109_v37  ;;  %vm381_vm0 = vcmp.lt.f32.partialorder %v85_v40, 0.0004427343  ;;  %v93_v56 = vmul.f32 %v212_v18, %v92_v41 }
  0x3e   :  { %v112_v57 = vand.u32 2147483647, %v216_v24  ;;  %vm385_vm1 = vcmp.lt.f32.partialorder %v94_v44, 0.0004427343  ;;  %v102_v62 = vmul.f32 %v214_v21, %v101_v45  ;;  %vm104_vm2 = vcmp.lt.f32.partialorder %v103_v48, 0.0004427343 }
  0x3f   :  { %v111_v4 = vmul.f32 %v216_v24, %v110_v52  ;;  %v156_v23 = vshrl.u32 %v155_v16, 7  ;;  %v120_v28 = vmul.f32 0.5, %v363_v32  ;;  %v167_v31 = vand.u32 127, %v155_v16 }
  0x40   :  { %vm113_vm3 = vcmp.lt.f32.partialorder %v112_v57, 0.0004427343  ;;  %v121_v36 = vmul.f32 0.5, %v365_v34  ;;  %v122_v41 = vmul.f32 0.5, %v367_v35 }
  0x41   :  { %v157_v25 = vadd.s32 8, %v156_v23  ;;  %v158_v26 = vadd.s32 16, %v156_v23  ;;  %v159_v30 = vadd.s32 24, %v156_v23  ;;  %v168_v33 = vmul.u32 128, %v156_v23 }
  0x42   :  { %v124_v45 = vadd.f32 0.25, %v120_v28  ;;  %v125_v48 = vadd.f32 0.25, %v121_v36 }
  0x43   :  { %v169_v37 = vmul.u32 128, %v157_v25  ;;  %v170_v39 = vmul.u32 128, %v158_v26  ;;  %v172_v29 = vadd.s32 %v168_v33, %v167_v31 }
  0x44   :  { %v218_v53 = vpop.eup %217  ;;  %v171_v47 = vmul.u32 128, %v159_v30 }
  0x45   :  { %v220_v58 = vpop.eup %219  ;;  %v81_v60 = vmul.f32 0.6931472, %v218_v53  ;;  %v173_v50 = vadd.s32 %v169_v37, %v167_v31  ;;  %v174_v34 = vadd.s32 %v170_v39, %v167_v31  ;;  %v126_v53 = vadd.f32 0.25, %v122_v41 }
  0x46   :  { %v222_v63 = vpop.eup %221  ;;  %v90_v1 = vmul.f32 0.6931472, %v220_v58  ;;  %v175_v35 = vadd.s32 %v171_v47, %v167_v31  ;;  %vm176_vm4 = vcmp.lt.s32.totalorder %v172_v29, 2000 }
  0x47   :  { %v87_v2 = vsel %vm381_vm0, %v84_v51, %v81_v60  ;;  %v99_v3 = vmul.f32 0.6931472, %v222_v63  ;;  %v224_v5 = vpop.eup %223  ;;  %vm177_vm5 = vcmp.lt.s32.totalorder %v173_v50, 2000  ;;  %vm178_vm6 = vcmp.lt.s32.totalorder %v174_v34, 2000 }
  0x48   :  { %v96_v7 = vsel %vm385_vm1, %v93_v56, %v90_v1  ;;  %v115_v8 = vadd.f32 %v87_v2, %v59_v54  ;;  %v108_v10 = vmul.f32 0.6931472, %v224_v5  ;;  %vm179_vm7 = vcmp.lt.s32.totalorder %v175_v35, 2000 }
  0x49   :  { %v105_v9 = vsel %vm104_vm2, %v102_v62, %v99_v3  ;;  %v116_v11 = vadd.f32 %v96_v7, %v60_v59 }
  0x4a   :  { %v117_v12 = vadd.f32 %v105_v9, %v61_v0  ;;  %v127_v13 = vsub.f32 0.0, %v115_v8  ;;  %v114_v14 = vsel %vm113_vm3, %v111_v4, %v108_v10 }
  0x4b   :  { %v128_v15 = vsub.f32 0.0, %v116_v11  ;;  %v118_v17 = vadd.f32 %v114_v14, %v62_v6 }
  0x4c   :  { %v129_v18 = vsub.f32 0.0, %v117_v12  ;;  %v131_v19 = vmul.f32 1.442695, %v127_v13 }
  0x4d   :  { %v133_v20 = vmul.f32 1.442695, %v128_v15  ;;  %v130_v21 = vsub.f32 0.0, %v118_v17 }
  0x4e   :  { %225 = vpow2.f32 %v131_v19  ;;  %v135_v22 = vmul.f32 1.442695, %v129_v18 }
  0x4f   :  { %227 = vpow2.f32 %v133_v20  ;;  %v137_v24 = vmul.f32 1.442695, %v130_v21 }
  0x50   :  { %229 = vpow2.f32 %v135_v22 }
  0x51   :  { %231 = vpow2.f32 %v137_v24 }
  0x58   :  { %v226_v38 = vpop.eup %225 }
  0x59   :  { %v228_v40 = vpop.eup %227  ;;  %v139_v43 = vsub.f32 1.0, %v226_v38 }
  0x5a   :  { %v230_v44 = vpop.eup %229  ;;  %v140_v46 = vsub.f32 1.0, %v228_v40 }
  0x5b   :  { %v141_v32 = vsub.f32 1.0, %v230_v44  ;;  %v143_v49 = vmul.f32 %v139_v43, %v139_v43  ;;  %v232_v51 = vpop.eup %231 }
  0x5c   :  { %v144_v52 = vmul.f32 %v140_v46, %v140_v46  ;;  %v142_v54 = vsub.f32 1.0, %v232_v51 }
  0x5d   :  { %v145_v55 = vmul.f32 %v141_v32, %v141_v32  ;;  %v147_v56 = vmul.f32 %v143_v49, %v123_v42 }
  0x5e   :  { %v148_v57 = vmul.f32 %v144_v52, %v124_v45  ;;  %v146_v58 = vmul.f32 %v142_v54, %v142_v54 }
  0x5f   :  { %v149_v59 = vmul.f32 %v145_v55, %v125_v48  ;;  %v151_v60 = vmul.f32 %v147_v56, %v115_v8 }
  0x60   :  { %v152_v61 = vmul.f32 %v148_v57, %v116_v11  ;;  %v150_v62 = vmul.f32 %v146_v58, %v126_v53 }
  0x61   :  { %v153_v63 = vmul.f32 %v149_v59, %v117_v12  ;;  %v180_v0 = vsel %vm176_vm4, %v151_v60, 0.0 }
  0x62   :  { %v181_v1 = vsel %vm177_vm5, %v152_v61, 0.0  ;;  %v154_v2 = vmul.f32 %v150_v62, %v118_v17 }
  0x63   :  { %v182_v3 = vsel %vm178_vm6, %v153_v63, 0.0  ;;  %v184_v4 = vadd.f32 %v181_v1, %v180_v0 }
  0x64   :  { %v183_v5 = vsel %vm179_vm7, %v154_v2, 0.0 }
  0x65   :  { %v185_v6 = vadd.f32 %v184_v4, %v182_v3 }
  0x67   :  { %v186_v7 = vadd.f32 %v185_v6, %v183_v5 }
  0x69   :  { %187 = vst [vmem:[#allocation7] sm:$0xff] %v186_v7 }
  0x6a   :  { %288 = shalt.err (!%p285_p6)
}
  0x6b   :  { %s289_s10 = scalar_lea.hbm %s411_s2, 128 }
  0x6c   :  { %p290_p7 = scmp.ne.s32.totalorder %s411_s2, %s289_s10  ;;  %p293_p8 = scmp.lt.u32.totalorder %s289_s10, %s411_s2 }
  0x6e   :  { %p295_p9 = pnand %p293_p8, %p290_p7 }
  0x70   :  { %298 = shalt.err (!%p295_p9)
}
  0x71   :  { %197 = dma.vmem_to_hbm [thread:$0]  %s195_s6, 128, %s411_s2, [#allocation4]  }
  0x72   :  { %303 = dma.done.wait [#allocation4], 128  }
  0x73   :  { %304 = vsyncadd [#allocation4], 4294967168 }
  0x74   :  { %201 = vsyncpa [#allocation3], 1 }
  0x75   :  { %202 = vsyncpa [#allocation6], 1 }
  0x76   :  { %203 = vsyncpa [#allocation4], 1 }

</bundles_post_ra>
